<compile_context>
chip_gen: v7x
topology: tpu7x:2x2x1
jax: 0.10.0
libtpu: 0.0.40
codegen_flags: <defaults>
</compile_context>

<pallas_src>
import jax
import jax.numpy as jnp
from jax.experimental import pallas as pl
from jax.experimental.pallas import tpu as pltpu


def _round_up(x, m):
    return ((x + m - 1) // m) * m


# ----------------------------------------------------------------------------
# Fused TwoMLPHead kernel: relu(x @ W6 + b6) @ W7 + b7 -> relu -> out
# ----------------------------------------------------------------------------
def _two_mlp_head_kernel(x_ref, w6_ref, b6_ref, w7_ref, b7_ref, o_ref):
    # fc6: bf16 MXU inputs, f32 accumulation, f32 bias + ReLU epilogue.
    h = jnp.dot(x_ref[...], w6_ref[...], preferred_element_type=jnp.float32)
    h = jnp.maximum(h + b6_ref[...], 0.0)
    # fc7: intermediate stays in VMEM/vregs (never written back to HBM).
    h = jnp.dot(h.astype(w7_ref.dtype), w7_ref[...],
                preferred_element_type=jnp.float32)
    h = jnp.maximum(h + b7_ref[...], 0.0)
    o_ref[...] = h.astype(o_ref.dtype)


def prepare_two_mlp_head_params(w6, b6, w7, b7, *, lane=128):
    """Pad weights/biases to lane-dense shapes and pre-cast weights to bf16
    once (hoisted out of the per-call wrapper)."""
    K, R = w6.shape
    assert w7.shape == (R, R) and b6.shape == (R,) and b7.shape == (R,)
    Kp = _round_up(K, lane)
    Rp = _round_up(R, lane)
    w6p = jnp.zeros((Kp, Rp), jnp.bfloat16).at[:K, :R].set(w6.astype(jnp.bfloat16))
    w7p = jnp.zeros((Rp, Rp), jnp.bfloat16).at[:R, :R].set(w7.astype(jnp.bfloat16))
    b6p = jnp.zeros((1, Rp), jnp.float32).at[0, :R].set(b6.astype(jnp.float32))
    b7p = jnp.zeros((1, Rp), jnp.float32).at[0, :R].set(b7.astype(jnp.float32))
    return {"w6": w6p, "b6": b6p, "w7": w7p, "b7": b7p, "K": K, "R": R}


def two_mlp_head_forward(x, params, *, tile_m=128):
    """x: (num_boxes, C, H, W) pooled features -> (num_boxes, R) float32.

    Equivalent to: x.flatten(1); relu(fc6(x)); relu(fc7(x)).
    """
    N = x.shape[0]
    x2 = x.reshape(N, -1)                      # flatten(start_dim=1)
    K, R = params["K"], params["R"]
    assert x2.shape[1] == K, f"expected {K} input features, got {x2.shape[1]}"
    Kp, Rp = params["w6"].shape
    Mp = _round_up(max(N, tile_m), tile_m)

    # Zero-pad rows/K to tile- and lane-aligned shapes; cast activations to
    # bf16 so HBM->VMEM traffic of the large operand is halved.
    xp = jnp.zeros((Mp, Kp), jnp.bfloat16).at[:N, :K].set(x2.astype(jnp.bfloat16))

    grid = (Mp // tile_m,)
    out = pl.pallas_call(
        _two_mlp_head_kernel,
        grid=grid,
        in_specs=[
            pl.BlockSpec((tile_m, Kp), lambda i: (i, 0)),  # rows streamed/pipelined
            pl.BlockSpec((Kp, Rp), lambda i: (0, 0)),      # W6 resident
            pl.BlockSpec((1, Rp), lambda i: (0, 0)),       # b6 resident
            pl.BlockSpec((Rp, Rp), lambda i: (0, 0)),      # W7 resident
            pl.BlockSpec((1, Rp), lambda i: (0, 0)),       # b7 resident
        ],
        out_specs=pl.BlockSpec((tile_m, Rp), lambda i: (i, 0)),
        out_shape=jax.ShapeDtypeStruct((Mp, Rp), jnp.float32),
        compiler_params=pltpu.CompilerParams(
            dimension_semantics=("parallel",),   # rows shard across 2 TCs on v7x
            vmem_limit_bytes=32 * 1024 * 1024,
        ),
    )(xp, params["w6"], params["b6"], params["w7"], params["b7"])

    return out[:N, :R]


# ----------------------------------------------------------------------------
# Main
# ----------------------------------------------------------------------------
if __name__ == "__main__":
    key = jax.random.PRNGKey(0)
    k_x, k_w6, k_b6, k_w7, k_b7 = jax.random.split(key, 5)

    NUM_BOXES = 256      # RoIs across the batch
    CH = 16              # pooled feature channels
    POOL = 4             # RoIAlign output spatial size
    REPR = 32            # representation_size
    IN_CHANNELS = CH * POOL * POOL    # 256 = flattened per-RoI feature size

    # Pooled-feature input, exactly what TwoMLPHead.forward receives.
    x = jax.random.uniform(k_x, (NUM_BOXES, CH, POOL, POOL), jnp.float32)

    w6 = (0.05 * jax.random.normal(k_w6, (IN_CHANNELS, REPR))).astype(jnp.float32)
    b6 = (0.05 * jax.random.normal(k_b6, (REPR,))).astype(jnp.float32)
    w7 = (0.05 * jax.random.normal(k_w7, (REPR, REPR))).astype(jnp.float32)
    b7 = (0.05 * jax.random.normal(k_b7, (REPR,))).astype(jnp.float32)

    params = prepare_two_mlp_head_params(w6, b6, w7, b7)

    out = two_mlp_head_forward(x, params)
    out = jax.block_until_ready(out)

    # Pure-JAX f32 reference; loose tolerance because MXU inputs are bf16.
    xf = x.reshape(NUM_BOXES, -1)
    ref = jnp.maximum(jnp.maximum(xf @ w6 + b6, 0.0) @ w7 + b7, 0.0)
    max_err = float(jnp.max(jnp.abs(out - ref)))
    assert out.shape == (NUM_BOXES, REPR), out.shape
    assert max_err < 5e-2, f"max abs err {max_err}"

    print("KERNEL_OK")
</pallas_src>

<mosaic_0001>
module attributes {stable_mosaic.version = 11 : i64} {
  func.func @_two_mlp_head_kernel(%arg0: i32, %arg1: memref<128x256xbf16, #tpu.memory_space<vmem>>, %arg2: memref<256x128xbf16, #tpu.memory_space<vmem>>, %arg3: memref<1x128xf32, #tpu.memory_space<vmem>>, %arg4: memref<128x128xbf16, #tpu.memory_space<vmem>>, %arg5: memref<1x128xf32, #tpu.memory_space<vmem>>, %arg6: memref<128x128xf32, #tpu.memory_space<vmem>>) attributes {dimension_semantics = [#tpu.dimension_semantics<parallel>], iteration_bounds = array<i64: 2>, scalar_prefetch = 0 : i64, scratch_operands = 0 : i64, tpu.core_type = #tpu.core_type<tc>, window_params = [{transform_indices = @transform_0, window_bounds = array<i64: 128, 256>}, {pipeline_mode = #tpu.pipeline_mode<synchronous>, transform_indices = @transform_1, window_bounds = array<i64: 256, 128>}, {pipeline_mode = #tpu.pipeline_mode<synchronous>, transform_indices = @transform_2, window_bounds = array<i64: 1, 128>}, {pipeline_mode = #tpu.pipeline_mode<synchronous>, transform_indices = @transform_3, window_bounds = array<i64: 128, 128>}, {pipeline_mode = #tpu.pipeline_mode<synchronous>, transform_indices = @transform_4, window_bounds = array<i64: 1, 128>}, {transform_indices = @transform_5, window_bounds = array<i64: 128, 128>}]} {
    %c0 = arith.constant 0 : index
    %c0_0 = arith.constant 0 : index
    %0 = vector.load %arg1[%c0, %c0_0] : memref<128x256xbf16, #tpu.memory_space<vmem>>, vector<128x256xbf16>
    %c0_1 = arith.constant 0 : index
    %c0_2 = arith.constant 0 : index
    %1 = vector.load %arg2[%c0_1, %c0_2] : memref<256x128xbf16, #tpu.memory_space<vmem>>, vector<256x128xbf16>
    %cst = arith.constant dense<0.000000e+00> : vector<128x128xf32>
    %2 = tpu.matmul %0, %1, %cst {dimension_numbers = #tpu.dot_dimension_numbers<[1], [0], [0], [1], [0, 0, 1, 1], [], []>} : vector<128x256xbf16>, vector<256x128xbf16>, vector<128x128xf32> -> vector<128x128xf32>
    %c0_3 = arith.constant 0 : index
    %c0_4 = arith.constant 0 : index
    %3 = vector.load %arg3[%c0_3, %c0_4] : memref<1x128xf32, #tpu.memory_space<vmem>>, vector<1x128xf32>
    %4 = vector.broadcast %3 : vector<1x128xf32> to vector<128x128xf32>
    %5 = arith.addf %2, %4 : vector<128x128xf32>
    %cst_5 = arith.constant 0.000000e+00 : f32
    %6 = vector.broadcast %cst_5 : f32 to vector<128x128xf32>
    %7 = arith.maximumf %5, %6 : vector<128x128xf32>
    %8 = arith.truncf %7 : vector<128x128xf32> to vector<128x128xbf16>
    %c0_6 = arith.constant 0 : index
    %c0_7 = arith.constant 0 : index
    %9 = vector.load %arg4[%c0_6, %c0_7] : memref<128x128xbf16, #tpu.memory_space<vmem>>, vector<128x128xbf16>
    %cst_8 = arith.constant dense<0.000000e+00> : vector<128x128xf32>
    %10 = tpu.matmul %8, %9, %cst_8 {dimension_numbers = #tpu.dot_dimension_numbers<[1], [0], [0], [1], [0, 0, 1, 1], [], []>} : vector<128x128xbf16>, vector<128x128xbf16>, vector<128x128xf32> -> vector<128x128xf32>
    %c0_9 = arith.constant 0 : index
    %c0_10 = arith.constant 0 : index
    %11 = vector.load %arg5[%c0_9, %c0_10] : memref<1x128xf32, #tpu.memory_space<vmem>>, vector<1x128xf32>
    %12 = vector.broadcast %11 : vector<1x128xf32> to vector<128x128xf32>
    %13 = arith.addf %10, %12 : vector<128x128xf32>
    %cst_11 = arith.constant 0.000000e+00 : f32
    %14 = vector.broadcast %cst_11 : f32 to vector<128x128xf32>
    %15 = arith.maximumf %13, %14 : vector<128x128xf32>
    %c0_12 = arith.constant 0 : index
    %c0_13 = arith.constant 0 : index
    %16 = vector.load %arg6[%c0_12, %c0_13] : memref<128x128xf32, #tpu.memory_space<vmem>>, vector<128x128xf32>
    tpu.vector_store %arg6[%c0_12, %c0_13], %15 {strides = array<i32>} : memref<128x128xf32, #tpu.memory_space<vmem>>, vector<128x128xf32>,
    return
  }
  func.func @transform_0(%arg0: i32) -> (i32, i32) {
    %c0_i32 = arith.constant 0 : i32
    %c0_i32_0 = arith.constant 0 : i32
    return %arg0, %c0_i32 : i32, i32
  }
  func.func @transform_1(%arg0: i32) -> (i32, i32) {
    %c0_i32 = arith.constant 0 : i32
    %c0_i32_0 = arith.constant 0 : i32
    %c0_i32_1 = arith.constant 0 : i32
    return %c0_i32, %c0_i32_0 : i32, i32
  }
  func.func @transform_2(%arg0: i32) -> (i32, i32) {
    %c0_i32 = arith.constant 0 : i32
    %c0_i32_0 = arith.constant 0 : i32
    %c0_i32_1 = arith.constant 0 : i32
    return %c0_i32, %c0_i32_0 : i32, i32
  }
  func.func @transform_3(%arg0: i32) -> (i32, i32) {
    %c0_i32 = arith.constant 0 : i32
    %c0_i32_0 = arith.constant 0 : i32
    %c0_i32_1 = arith.constant 0 : i32
    return %c0_i32, %c0_i32_0 : i32, i32
  }
  func.func @transform_4(%arg0: i32) -> (i32, i32) {
    %c0_i32 = arith.constant 0 : i32
    %c0_i32_0 = arith.constant 0 : i32
    %c0_i32_1 = arith.constant 0 : i32
    return %c0_i32, %c0_i32_0 : i32, i32
  }
  func.func @transform_5(%arg0: i32) -> (i32, i32) {
    %c0_i32 = arith.constant 0 : i32
    %c0_i32_0 = arith.constant 0 : i32
    return %arg0, %c0_i32 : i32, i32
  }
}

</mosaic_0001>

<bundles_post_ra>
// kernel: tpu_custom_call.1
= control target key start
LH: loop header
LB: loop body
LE: loop exit
PB: predicated region body
PF: predicated region fallthrough
CT: control target
= control target key end

     0   :  { %10 = vsyncpa [#allocation3], 0  ;;  %s1728_s0 = inlined_call_operand.hbm [shape: bf16[256,256], index: 0, kind: input, shape index: {}]   ;;  %s1729_s1 = inlined_call_operand.hbm [shape: bf16[256,128], index: 1, kind: input, shape index: {}]   ;;  %s1730_s2 = inlined_call_operand.vmem [shape: f32[1,128], index: 2, kind: input, shape index: {}]   ;;  %s1731_s3 = inlined_call_operand.hbm [shape: bf16[128,128], index: 3, kind: input, shape index: {}]   ;;  %s1732_s4 = inlined_call_operand.vmem [shape: f32[1,128], index: 4, kind: input, shape index: {}]   ;;  %s1733_s5 = inlined_call_operand.hbm [shape: f32[256,128], index: 5, kind: output, shape index: {}]  }
   0x1   :  { %12 = vsyncpa [#allocation3 + $0x1], 0 }
   0x2   :  { %13 = vsyncpa [#allocation6], 0 }
   0x3   :  { %14 = vsyncpa [#allocation4], 0 }
   0x4   :  { %16 = vsyncpa [#allocation4 + $0x1], 0  ;;  %s1429_s18 = smov 0   ;;  %s1431_s19 = smov 0  }
   0x5   :  { %s1433_s20 = smov 0   ;;  %s1435_s21 = smov 0  }
   0x6 LB: > { %s1450_s22 = sadd.s32 4294967295, %s1387_s21   ;;  %s934_s23 = sadd.s32 4294967294, %s1387_s21   ;;  %s1387_s21 = sphi %s1435_s21, %s1753_s21   ;;  %s1383_s20 = sphi %s1433_s20, %s1752_s20   ;;  %s1379_s19 = sphi %s1431_s19, %s1751_s19   ;;  %s1375_s18 = sphi %s1429_s18, %s1750_s18  }
   0x7   : > { %p42_p0 = scmp.ne.s32.totalorder %s1379_s19, %s1375_s18  ;;  %p1734_p1 = scmp.eq.s32.totalorder %s1450_s22, 0 }
   0x8   : > { %p156_p3 = scmp.eq.s32.totalorder %s934_s23, 1  ;;  %p935_p5 = scmp.ge.s32.totalorder %s1387_s21, 1 }
   0x9   : > { %p1459_p4 = por %p1734_p1, %p42_p0  ;;  %p163_p7 = scmp.lt.s32.totalorder %s1387_s21, 3 }
   0xa   : > { %p1464_p6 = por %p156_p3, %p42_p0  ;;  %s1389_s27 = smov [#allocation5]  }
   0xb   : > { %s1737_s24 = scalar_select %p1459_p4, 1, 0 }
   0xc   : > { %s1738_s25 = scalar_select %p1464_p6, 1, 0 }
   0xd   : > { %p1469_p8 = pnand %p935_p5, %p163_p7  ;;  %s175_s28 = sshll.u32 %s1389_s27, 4  ;;  %s1473_s28 = int_to_ptr.vmem [resolvable:$true] %s175_s28 }
   0xe   : > { %s1390_s30 = smov [#allocation7]   ;;  %s1231_s9 = scalar_lea.hbm %s1729_s1, 2048 }
   0xf   : > { %p1122_p9 = pneg %p1469_p8  ;;  %s191_s6 = sshll.u32 %s1390_s30, 4  ;;  %s1484_s6 = int_to_ptr.vmem [resolvable:$true] %s191_s6 }
  0x10   : > { %p1232_p12 = scmp.ne.s32.totalorder %s1729_s1, %s1231_s9  ;;  %p1238_p5 = scmp.lt.u32.totalorder %s1231_s9, %s1729_s1 }
  0x11   : > { %p1480_p11 = pnand %p1122_p9, %p1734_p1 }
  0x13   : > { %p1233_p13 = pneg %p1480_p11 }
  0x15   : > { %p1234_p0 = pnand %p1233_p13, %p1232_p12 }
  0x17   : > { %p1235_p3 = pneg %p1234_p0 }
  0x19   : > { %p1240_p7 = pnand %p1238_p5, %p1235_p3 }
  0x1b   : > { %1243 = shalt.err (!%p1240_p7)
}
  0x1c   : > { %s1244_s14 = scalar_lea.vmem %s1473_s28, 2048  ;;  %p1252_p2 = scmp.lt.s32.totalorder %s1473_s28, %s1473_s28 }
  0x1d   : > { %p1245_p9 = scmp.ne.s32.totalorder %s1473_s28, %s1244_s14  ;;  %p1253_p12 = scmp.lt.s32.totalorder %s1244_s14, %s1244_s14 }
  0x1f   : > { %p1247_p10 = pnand %p1245_p9, %p1233_p13  ;;  %p1254_p0 = por %p1253_p12, %p1252_p2 }
  0x21   : > { %p1248_p1 = pneg %p1247_p10 }
  0x23   : > { %p1255_p6 = pnand %p1254_p0, %p1248_p1 }
  0x25   : > { %1258 = shalt.err (!%p1255_p6)
}
  0x26   : > { %s1391_s15 = smov 64   ;;  %s1392_s16 = smov 4  }
  0x27   : > { %1125 = dma.hbm_to_vmem [thread:$0]  (!%p1480_p11), %s1729_s1, 2048, %s1473_s28, [#allocation6], %s1391_s15, %s1391_s15, %s1392_s16  }
  0x28   : > { %s1259_s7 = scalar_lea.hbm %s1731_s3, 1024 }
  0x29   : > { %p1260_p2 = scmp.ne.s32.totalorder %s1731_s3, %s1259_s7  ;;  %p1266_p10 = scmp.lt.u32.totalorder %s1259_s7, %s1731_s3 }
  0x2b   : > { %p1262_p1 = pnand %p1260_p2, %p1233_p13 }
  0x2d   : > { %p1263_p6 = pneg %p1262_p1 }
  0x2f   : > { %p1268_p3 = pnand %p1266_p10, %p1263_p6 }
  0x31   : > { %1271 = shalt.err (!%p1268_p3)
}
  0x32   : > { %s1272_s28 = scalar_lea.vmem %s1484_s6, 1024  ;;  %p1280_p12 = scmp.lt.s32.totalorder %s1484_s6, %s1484_s6 }
  0x33   : > { %p1273_p5 = scmp.ne.s32.totalorder %s1484_s6, %s1272_s28  ;;  %p1281_p0 = scmp.lt.s32.totalorder %s1272_s28, %s1272_s28 }
  0x35   : > { %p1275_p7 = pnand %p1273_p5, %p1233_p13  ;;  %p1282_p2 = por %p1281_p0, %p1280_p12 }
  0x37   : > { %p1276_p9 = pneg %p1275_p7 }
  0x39   : > { %p1283_p1 = pnand %p1282_p2, %p1276_p9 }
  0x3b   : > { %1286 = shalt.err (!%p1283_p1)
}
  0x3c   : > { %1128 = dma.hbm_to_vmem [thread:$0]  (!%p1480_p11), %s1731_s3, 1024, %s1484_s6, [#allocation6], %s1391_s15, %s1391_s15, %s1392_s16  }
  0x3d   : > { %s1539_s14 = sadd.s32 1, %s1387_s21   ;;  %s29_s29 = sadd.s32 1, %s1383_s20 }
  0x3e   : > { %s26_s17 = ssub.s32 %s1387_s21, %s1539_s14  ;;  %p36_p13 = scmp.ne.s32.totalorder %s1383_s20, %s1379_s19 }
  0x3f   : > { %p27_p6 = scmp.eq.s32.totalorder %s26_s17, 0  ;;  %p37_p10 = scmp.eq.s32.totalorder %s1387_s21, 0 }
  0x40   : > { %p1741_p3 = scmp.eq.s32.totalorder %s1450_s22, 1  ;;  %p1139_p7 = scmp.lt.s32.totalorder %s1387_s21, 2 }
  0x41   : > { %s1555_s27 = scalar_select %p27_p6, %s1383_s20, %s29_s29  }
  0x42   : > { %p1549_p5 = por %p1741_p3, %p36_p13  ;;  %p38_p9 = por %p37_p10, %p36_p13 }
  0x43   : > { %s208_s30 = sand.u32 1, %s1383_s20   ;;  %s996_s6 = sshll.u32 %s1387_s21, 11 }
  0x44   : > { %s1742_s23 = scalar_select %p1549_p5, 1, 0 }
  0x45   : > { %s939_s7 = sshll.u32 %s208_s30, 7  ;;  %s1562_s8 = scalar_lea.hbm %s1728_s0, %s996_s6 }
  0x46   : > { %s212_s9 = scalar_lea.vmem [#allocation2], %s939_s7  ;;  %p1566_p11 = pnand %p1139_p7, %p38_p9 }
  0x47   : > { %s220_s10 = sshll.u32 %s212_s9, 4  ;;  %s1570_s28 = scalar_lea.sflag [#allocation3], %s208_s30  ;;  %s1564_s10 = int_to_ptr.vmem [resolvable:$true] %s220_s10 }
  0x48   : > { %s1287_s12 = scalar_lea.hbm %s1562_s8, 2048  ;;  %p1289_p0 = pneg %p1566_p11 }
  0x49   : > { %p1288_p12 = scmp.ne.s32.totalorder %s1562_s8, %s1287_s12  ;;  %s1292_s17 = scalar_lea.hbm %s1728_s0, 4096 }
  0x4a   : > { %p1293_p13 = scmp.lt.u32.totalorder %s1562_s8, %s1728_s0  ;;  %p1294_p6 = scmp.lt.u32.totalorder %s1292_s17, %s1287_s12 }
  0x4b   : > { %p1290_p2 = pnand %p1289_p0, %p1288_p12  ;;  %p1296_p3 = scmp.lt.u32.totalorder %s1287_s12, %s1562_s8 }
  0x4c   : > { %p1295_p10 = por %p1294_p6, %p1293_p13 }
  0x4d   : > { %p1291_p1 = pneg %p1290_p2 }
  0x4e   : > { %p1297_p7 = por %p1296_p3, %p1295_p10 }
  0x50   : > { %p1298_p9 = pnand %p1297_p7, %p1291_p1 }
  0x52   : > { %1301 = shalt.err (!%p1298_p9)
}
  0x53   : > { %s1302_s30 = scalar_lea.vmem %s1564_s10, 2048  ;;  %s1393_s15 = smov [#allocation2]  }
  0x54   : > { %p1303_p12 = scmp.ne.s32.totalorder %s1564_s10, %s1302_s30  ;;  %s1307_s16 = sshll.u32 %s1393_s15, 4  ;;  %s1308_s16 = int_to_ptr.vmem [resolvable:$false] %s1307_s16 }
  0x55   : > { %s1309_s9 = scalar_lea.vmem %s1308_s16, 4096  ;;  %p1310_p4 = scmp.lt.s32.totalorder %s1564_s10, %s1308_s16 }
  0x56   : > { %p1305_p2 = pnand %p1303_p12, %p1289_p0  ;;  %p1311_p13 = scmp.lt.s32.totalorder %s1309_s9, %s1302_s30 }
  0x58   : > { %p1306_p5 = pneg %p1305_p2  ;;  %p1312_p6 = por %p1311_p13, %p1310_p4 }
  0x5a   : > { %p1313_p10 = pnand %p1312_p6, %p1306_p5 }
  0x5c   : > { %1316 = shalt.err (!%p1313_p10)
}
  0x5d   : > { %s1394_s12 = smov 128   ;;  %s1395_s13 = smov 8  }
  0x5e   : > { %1132 = dma.hbm_to_vmem [thread:$0]  (!%p1566_p11), %s1562_s8, 2048, %s1564_s10, %s1570_s28, %s1394_s12, %s1394_s12, %s1395_s13  }
  0x5f   : > { %232 = sbr.rel (%p1469_p8) target bundleno = 652 (0x28c), region = 40  ;;  %s1601_s29 = sand.u32 (!%p1469_p8), 1, %s1379_s19  }
  0x60   : > { %s944_s17 = sshll.u32 (!%p1469_p8), %s1601_s29, 7  ;;  %s235_s7 = scalar_lea.sflag (!%p1469_p8), [#allocation3], %s1601_s29 }
  0x61   : > { %s1607_s6 = scalar_lea.vmem (!%p1469_p8), [#allocation2], %s944_s17  ;;  %p1744_p4 = scmp.ne.s32.totalorder (!%p1469_p8), %s1737_s24, 0 }
  0x66   : > { %1362 = dma.done.wait (%p1744_p4), %s235_s7, 2048  }
  0x67   : > { %1364 = vsyncadd (%p1744_p4), %s235_s7, 4294965248  ;;  %p1745_p5 = scmp.eq.s32.totalorder %s1450_s22, 0 }
  0x69   : > { %1366 = dma.done.wait (%p1745_p5), [#allocation6], 3072   ;;  %p1746_p8 = pmov %p1745_p5 }
  0x6a   : > { %v1183_v0 = vld [vmem:[#allocation5 + $0x40] sm:$0xff]   ;;  %v1185_v2 = vld [vmem:[#allocation5 + $0x48] sm:$0xff]   ;;  %v1187_v4 = vld [vmem:[#allocation5 + $0x50] sm:$0xff]   ;;  %s1659_s11 = scalar_lea.vmem [#allocation8], %s944_s17  ;;  %s997_s28 = sshll.u32 %s1450_s22, 11 }
  0x6b   : > { %1368 = vsyncadd (%p1746_p8), [#allocation6], 4294964224  ;;  %v1184_v1 = vld [vmem:[#allocation5] sm:$0xff]   ;;  %998 = vmatprep.subr.bf16.mxu0 %v1183_v0  ;;  %v1186_v3 = vld [vmem:[#allocation5 + $0x8] sm:$0xff]   ;;  %s842_s30 = sshll.u32 %s1659_s11, 4  ;;  %s1679_s9 = scalar_lea.hbm %s1733_s5, %s997_s28  ;;  %s1681_s30 = int_to_ptr.vmem [resolvable:$true] %s842_s30 }
  0x6c   : > { %999 = vmatpush3.bf16.msra.mxu0 %v1184_v1  ;;  %v1188_v5 = vld [vmem:[#allocation5 + $0x10] sm:$0xff]   ;;  %v1189_v6 = vld [vmem:[#allocation5 + $0x58] sm:$0xff]   ;;  %v1191_v8 = vld [vmem:[#allocation5 + $0x60] sm:$0xff]   ;;  %s829_s22 = scalar_lea.sflag [#allocation4], %s1601_s29  ;;  %s1317_s12 = scalar_lea.vmem %s1681_s30, 2048 }
  0x6d   : > { %1000 = vmatprep.subr.bf16.mxu0 %v1185_v2  ;;  %v1190_v7 = vld [vmem:[#allocation5 + $0x18] sm:$0xff]   ;;  %v1192_v9 = vld [vmem:[#allocation5 + $0x20] sm:$0xff]   ;;  %v1193_v10 = vld [vmem:[#allocation5 + $0x68] sm:$0xff]   ;;  %p1318_p11 = scmp.ne.s32.totalorder %s1681_s30, %s1317_s12  ;;  %p1747_p0 = scmp.ne.s32.totalorder %s1742_s23, 0 }
  0x6e   : > { %v1201_v11 = vld [vmem:[%s1607_s6 + $0x4] ss:$8 sps:$4 sm:$0xff]   ;;  %v1195_v13 = vld [vmem:[#allocation5 + $0x70] sm:$0xff]   ;;  %v1197_v15 = vld [vmem:[#allocation5 + $0x78] sm:$0xff]   ;;  %s1396_s13 = smov [#allocation8]  }
  0x6f   : > { %v1194_v12 = vld [vmem:[#allocation5 + $0x28] sm:$0xff]   ;;  %539 = vmatprep.mubr.bf16.mxu0 %v1201_v11  ;;  %v1196_v14 = vld [vmem:[#allocation5 + $0x30] sm:$0xff]   ;;  %v1198_v16 = vld [vmem:[#allocation5 + $0x38] sm:$0xff]   ;;  %p1319_p1 = pnand %p1318_p11, %p1747_p0  ;;  %s1321_s17 = sshll.u32 %s1396_s13, 4  ;;  %s1322_s17 = int_to_ptr.vmem [resolvable:$false] %s1321_s17 }
  0x70   : > { %1001 = vmatpush3.bf16.msra.mxu0 %v1186_v3  ;;  %v1223_v17 = vld [vmem:[#allocation7] sm:$0xff]   ;;  %v1224_v19 = vld [vmem:[#allocation7 + $0x8] sm:$0xff]   ;;  %v1202_v20 = vld [vmem:[%s1607_s6 + $0x14] ss:$8 sps:$4 sm:$0xff]   ;;  %s1323_s7 = scalar_lea.vmem %s1322_s17, 4096  ;;  %p1324_p7 = scmp.lt.s32.totalorder %s1681_s30, %s1322_s17 }
  0x71   : > { %1002 = vmatprep.subr.bf16.mxu0 %v1187_v4  ;;  %v1199_v18 = vld [vmem:[%s1607_s6] ss:$8 sps:$4 sm:$0xff]   ;;  %1078 = vmatprep.subr.bf16.mxu1 %v1223_v17  ;;  %v1225_v21 = vld [vmem:[#allocation7 + $0x10] sm:$0xff]   ;;  %v1205_v23 = vld [vmem:[%s1607_s6 + $0x24] ss:$8 sps:$4 sm:$0xff]   ;;  %p1320_p3 = pneg %p1319_p1  ;;  %p1325_p9 = scmp.lt.s32.totalorder %s1323_s7, %s1317_s12 }
  0x72   : > { %1079 = vmatpush3.bf16.msra.mxu1 %v1223_v17  ;;  %v1204_v22 = vld [vmem:[%s1607_s6 + $0x10] ss:$8 sps:$4 sm:$0xff]   ;;  %v1207_v24 = vld [vmem:[%s1607_s6 + $0x20] ss:$8 sps:$4 sm:$0xff]   ;;  %v1208_v25 = vld [vmem:[%s1607_s6 + $0x34] ss:$8 sps:$4 sm:$0xff]  }
  0x73   : > { %1080 = vmatprep.subr.bf16.mxu1 %v1224_v19  ;;  %v1210_v26 = vld [vmem:[%s1607_s6 + $0x30] ss:$8 sps:$4 sm:$0xff]   ;;  %v1211_v27 = vld [vmem:[%s1607_s6 + $0x44] ss:$8 sps:$4 sm:$0xff]   ;;  %v1213_v28 = vld [vmem:[%s1607_s6 + $0x40] ss:$8 sps:$4 sm:$0xff]   ;;  %p1326_p12 = por %p1325_p9, %p1324_p7 }
  0x74   : > { %1003 = vmatpush3.bf16.msra.mxu0 %v1188_v5  ;;  %v1214_v29 = vld [vmem:[%s1607_s6 + $0x54] ss:$8 sps:$4 sm:$0xff]   ;;  %v1216_v30 = vld [vmem:[%s1607_s6 + $0x50] ss:$8 sps:$4 sm:$0xff]   ;;  %v1217_v31 = vld [vmem:[%s1607_s6 + $0x64] ss:$8 sps:$4 sm:$0xff]  }
  0x75   : > { %1004 = vmatprep.subr.bf16.mxu0 %v1189_v6  ;;  %v1219_v32 = vld [vmem:[%s1607_s6 + $0x60] ss:$8 sps:$4 sm:$0xff]   ;;  %v1220_v33 = vld [vmem:[%s1607_s6 + $0x74] ss:$8 sps:$4 sm:$0xff]   ;;  %v1222_v34 = vld [vmem:[%s1607_s6 + $0x70] ss:$8 sps:$4 sm:$0xff]   ;;  %p1327_p2 = pnand %p1326_p12, %p1320_p3 }
  0x76   : > { %1081 = vmatpush3.bf16.msra.mxu1 %v1224_v19  ;;  %v1226_v35 = vld [vmem:[#allocation7 + $0x18] sm:$0xff]   ;;  %v1227_v36 = vld [vmem:[#allocation7 + $0x20] sm:$0xff]   ;;  %v1228_v37 = vld [vmem:[#allocation7 + $0x28] sm:$0xff]  }
  0x77   : > { %1082 = vmatprep.subr.bf16.mxu1 %v1225_v21  ;;  %v1229_v38 = vld [vmem:[#allocation7 + $0x30] sm:$0xff]   ;;  %v1230_v39 = vld [vmem:[#allocation7 + $0x38] sm:$0xff]   ;;  %v1636_v42 = vld [vmem:[%s1730_s2] ss:$0 sm:$0xff] }
  0x78   : > { %1005 = vmatpush3.bf16.msra.mxu0 %v1190_v7 }
  0x79   : > { %1006 = vmatprep.subr.bf16.mxu0 %v1191_v8 }
  0x7a   : > { %1083 = vmatpush3.bf16.msra.mxu1 %v1225_v21 }
  0x7b   : > { %1084 = vmatprep.subr.bf16.mxu1 %v1226_v35 }
  0x7c   : > { %1007 = vmatpush3.bf16.msra.mxu0 %v1192_v9 }
  0x7d   : > { %1008 = vmatprep.subr.bf16.mxu0 %v1193_v10 }
  0x7e   : > { %1085 = vmatpush3.bf16.msra.mxu1 %v1226_v35 }
  0x7f   : > { %1086 = vmatprep.subr.bf16.mxu1 %v1227_v36 }
  0x80   : > { %1009 = vmatpush3.bf16.msra.mxu0 %v1194_v12 }
  0x81   : > { %1010 = vmatprep.subr.bf16.mxu0 %v1195_v13 }
  0x82   : > { %1087 = vmatpush3.bf16.msra.mxu1 %v1227_v36 }
  0x83   : > { %1088 = vmatprep.subr.bf16.mxu1 %v1228_v37 }
  0x84   : > { %1011 = vmatpush3.bf16.msra.mxu0 %v1196_v14 }
  0x85   : > { %1012 = vmatprep.subr.bf16.mxu0 %v1197_v15 }
  0x86   : > { %1089 = vmatpush3.bf16.msra.mxu1 %v1228_v37 }
  0x87   : > { %1090 = vmatprep.subr.bf16.mxu1 %v1229_v38 }
  0x88   : > { %1013 = vmatpush3.bf16.msra.mxu0 %v1198_v16 }
  0x8a   : > { %1091 = vmatpush3.bf16.msra.mxu1 %v1229_v38 }
  0x8b   : > { %540 = vmatmul.mubr.bf16.vlgmr.msra.gmra.mrb[0].mxu0 %v1199_v18  ;;  %1092 = vmatprep.subr.bf16.mxu1 %v1230_v39 }
  0x8c   : > { %547 = vmatprep.mubr.bf16.mxu0 %v1202_v20 }
  0x8e   : > { %1093 = vmatpush3.bf16.msra.mxu1 %v1230_v39 }
  0x93   : > { %548 = vmatmul.mubr.bf16.gmra.mrb[4].mxu0 %v1204_v22 }
  0x94   : > { %555 = vmatprep.mubr.bf16.mxu0 %v1205_v23 }
  0x9b   : > { %556 = vmatmul.mubr.bf16.gmra.mrb[8].mxu0 %v1207_v24 }
  0x9c   : > { %563 = vmatprep.mubr.bf16.mxu0 %v1208_v25 }
  0xa3   : > { %564 = vmatmul.mubr.bf16.gmra.mrb[12].mxu0 %v1210_v26 }
  0xa4   : > { %571 = vmatprep.mubr.bf16.mxu0 %v1211_v27 }
  0xab   : > { %572 = vmatmul.mubr.bf16.gmra.mrb[16].mxu0 %v1213_v28 }
  0xac   : > { %579 = vmatprep.mubr.bf16.mxu0 %v1214_v29 }
  0xb3   : > { %580 = vmatmul.mubr.bf16.gmra.mrb[20].mxu0 %v1216_v30 }
  0xb4   : > { %587 = vmatprep.mubr.bf16.mxu0 %v1217_v31 }
  0xbb   : > { %588 = vmatmul.mubr.bf16.gmra.mrb[24].mxu0 %v1219_v32 }
  0xbc   : > { %595 = vmatprep.mubr.bf16.mxu0 %v1220_v33 }
  0xc3   : > { %596 = vmatmul.mubr.bf16.gmra.mrb[28].mxu0 %v1222_v34 }
 0x15e   : > { %v1014_v40 = vpop.f32.mrb[0].mxu0 }
 0x15f   : > { %v1015_v41 = vpop.f32.mrb[1].mxu0 }
 0x160   : > { %v1016_v43 = vadd.f32 %v1015_v41, %v1014_v40  ;;  %v1017_v44 = vpop.f32.mrb[2].mxu0 }
 0x161   : > { %v1018_v45 = vpop.f32.mrb[3].mxu0 }
 0x162   : > { %v1019_v46 = vadd.f32 %v1018_v45, %v1017_v44  ;;  %v542_v47 = vadd.f32 %v1016_v43, %v1636_v42 }
 0x164   : > { %v545_v48 = vadd.f32 %v1019_v46, %v1636_v42  ;;  %v604_v50 = vmax.f32 %v542_v47, 0.0 }
 0x166   : > { %v1020_v49 = vpop.f32.mrb[4].mxu0  ;;  %v605_v51 = vmax.f32 %v545_v48, 0.0 }
 0x167   : > { %v1021_v52 = vpop.f32.mrb[5].mxu0 }
 0x168   : > { %v1022_v53 = vadd.f32 %v1021_v52, %v1020_v49  ;;  %v1023_v54 = vpop.f32.mrb[6].mxu0  ;;  %v620_v55 = vpack.c.bf16 %v605_v51, %v604_v50 }
 0x169   : > { %v1024_v56 = vpop.f32.mrb[7].mxu0 }
 0x16a   : > { %v550_v57 = vadd.f32 %v1022_v53, %v1636_v42  ;;  %v1025_v58 = vadd.f32 %v1024_v56, %v1023_v54  ;;  %1094 = vmatprep.mubr.bf16.mxu1 %v620_v55 }
 0x16c   : > { %v553_v59 = vadd.f32 %v1025_v58, %v1636_v42  ;;  %v606_v60 = vmax.f32 %v550_v57, 0.0 }
 0x16e   : > { %v607_v61 = vmax.f32 %v553_v59, 0.0  ;;  %v1026_v62 = vpop.f32.mrb[8].mxu0 }
 0x16f   : > { %v1027_v63 = vpop.f32.mrb[9].mxu0 }
 0x170   : > { %v1028_v0 = vadd.f32 %v1027_v63, %v1026_v62  ;;  %v1029_v1 = vpop.f32.mrb[10].mxu0  ;;  %v621_v2 = vpack.c.bf16 %v607_v61, %v606_v60 }
 0x171   : > { %v1030_v3 = vpop.f32.mrb[11].mxu0 }
 0x172   : > { %v558_v4 = vadd.f32 %v1028_v0, %v1636_v42  ;;  %v1031_v5 = vadd.f32 %v1030_v3, %v1029_v1  ;;  %1095 = vmatmul.mubr.bf16.vlgmr.msra.gmra.mrb[0].mxu1 %v621_v2  ;;  %v981_v2 = vld [vmem:[%s1732_s4] ss:$0 sm:$0xff] }
 0x174   : > { %v561_v6 = vadd.f32 %v1031_v5, %v1636_v42  ;;  %v608_v7 = vmax.f32 %v558_v4, 0.0 }
 0x176   : > { %v609_v8 = vmax.f32 %v561_v6, 0.0  ;;  %v1032_v9 = vpop.f32.mrb[12].mxu0 }
 0x177   : > { %v1033_v10 = vpop.f32.mrb[13].mxu0 }
 0x178   : > { %v1034_v11 = vadd.f32 %v1033_v10, %v1032_v9  ;;  %v1035_v12 = vpop.f32.mrb[14].mxu0  ;;  %v622_v13 = vpack.c.bf16 %v609_v8, %v608_v7 }
 0x179   : > { %v1036_v14 = vpop.f32.mrb[15].mxu0 }
 0x17a   : > { %v566_v15 = vadd.f32 %v1034_v11, %v1636_v42  ;;  %v1037_v16 = vadd.f32 %v1036_v14, %v1035_v12  ;;  %1098 = vmatprep.mubr.bf16.mxu1 %v622_v13 }
 0x17c   : > { %v569_v17 = vadd.f32 %v1037_v16, %v1636_v42  ;;  %v610_v18 = vmax.f32 %v566_v15, 0.0 }
 0x17e   : > { %v611_v19 = vmax.f32 %v569_v17, 0.0  ;;  %v1038_v20 = vpop.f32.mrb[16].mxu0 }
 0x17f   : > { %v1039_v21 = vpop.f32.mrb[17].mxu0 }
 0x180   : > { %v1040_v22 = vadd.f32 %v1039_v21, %v1038_v20  ;;  %v1041_v23 = vpop.f32.mrb[18].mxu0  ;;  %v623_v24 = vpack.c.bf16 %v611_v19, %v610_v18 }
 0x181   : > { %v1042_v25 = vpop.f32.mrb[19].mxu0 }
 0x182   : > { %v574_v26 = vadd.f32 %v1040_v22, %v1636_v42  ;;  %v1043_v27 = vadd.f32 %v1042_v25, %v1041_v23  ;;  %1099 = vmatmul.mubr.bf16.gmra.mrb[4].mxu1 %v623_v24 }
 0x184   : > { %v577_v28 = vadd.f32 %v1043_v27, %v1636_v42  ;;  %v612_v29 = vmax.f32 %v574_v26, 0.0 }
 0x186   : > { %v613_v30 = vmax.f32 %v577_v28, 0.0  ;;  %v1044_v31 = vpop.f32.mrb[20].mxu0 }
 0x187   : > { %v1045_v32 = vpop.f32.mrb[21].mxu0 }
 0x188   : > { %v1046_v33 = vadd.f32 %v1045_v32, %v1044_v31  ;;  %v1047_v34 = vpop.f32.mrb[22].mxu0  ;;  %v624_v35 = vpack.c.bf16 %v613_v30, %v612_v29 }
 0x189   : > { %v1048_v36 = vpop.f32.mrb[23].mxu0 }
 0x18a   : > { %v582_v37 = vadd.f32 %v1046_v33, %v1636_v42  ;;  %v1049_v38 = vadd.f32 %v1048_v36, %v1047_v34  ;;  %1102 = vmatprep.mubr.bf16.mxu1 %v624_v35 }
 0x18c   : > { %v585_v39 = vadd.f32 %v1049_v38, %v1636_v42  ;;  %v614_v40 = vmax.f32 %v582_v37, 0.0 }
 0x18e   : > { %v615_v41 = vmax.f32 %v585_v39, 0.0  ;;  %v1050_v43 = vpop.f32.mrb[24].mxu0 }
 0x18f   : > { %v1051_v44 = vpop.f32.mrb[25].mxu0 }
 0x190   : > { %v1052_v45 = vadd.f32 %v1051_v44, %v1050_v43  ;;  %v1053_v46 = vpop.f32.mrb[26].mxu0  ;;  %v625_v47 = vpack.c.bf16 %v615_v41, %v614_v40 }
 0x191   : > { %v1054_v48 = vpop.f32.mrb[27].mxu0 }
 0x192   : > { %v590_v49 = vadd.f32 %v1052_v45, %v1636_v42  ;;  %v1055_v50 = vadd.f32 %v1054_v48, %v1053_v46  ;;  %1103 = vmatmul.mubr.bf16.gmra.mrb[8].mxu1 %v625_v47 }
 0x194   : > { %v593_v51 = vadd.f32 %v1055_v50, %v1636_v42  ;;  %v616_v52 = vmax.f32 %v590_v49, 0.0 }
 0x196   : > { %v617_v53 = vmax.f32 %v593_v51, 0.0  ;;  %v1056_v54 = vpop.f32.mrb[28].mxu0 }
 0x197   : > { %v1057_v55 = vpop.f32.mrb[29].mxu0 }
 0x198   : > { %v1058_v56 = vadd.f32 %v1057_v55, %v1056_v54  ;;  %v1059_v57 = vpop.f32.mrb[30].mxu0  ;;  %v626_v58 = vpack.c.bf16 %v617_v53, %v616_v52 }
 0x199   : > { %v1060_v59 = vpop.f32.mrb[31].mxu0 }
 0x19a   : > { %v598_v60 = vadd.f32 %v1058_v56, %v1636_v42  ;;  %v1061_v61 = vadd.f32 %v1060_v59, %v1059_v57  ;;  %1106 = vmatprep.mubr.bf16.mxu1 %v626_v58 }
 0x19c   : > { %v601_v62 = vadd.f32 %v1061_v61, %v1636_v42  ;;  %v618_v63 = vmax.f32 %v598_v60, 0.0 }
 0x19e   : > { %v619_v0 = vmax.f32 %v601_v62, 0.0 }
 0x1a0   : > { %v627_v1 = vpack.c.bf16 %v619_v0, %v618_v63 }
 0x1a2   : > { %1107 = vmatmul.mubr.bf16.gmra.mrb[12].mxu1 %v627_v1 }
 0x245   : > { %v1096_v3 = vpop.f32.mrb[0].mxu1 }
 0x246   : > { %v742_v4 = vadd.f32 %v1096_v3, %v981_v2  ;;  %v733_v5 = vpop.f32.mrb[1].mxu1 }
 0x247   : > { %v734_v6 = vadd.f32 %v981_v2, %v733_v5  ;;  %v1097_v7 = vpop.f32.mrb[2].mxu1 }
 0x248   : > { %v798_v8 = vmax.f32 %v742_v4, 0.0  ;;  %v745_v9 = vadd.f32 %v1097_v7, %v981_v2  ;;  %v736_v10 = vpop.f32.mrb[3].mxu1 }
 0x249   : > { %v796_v11 = vmax.f32 %v734_v6, 0.0  ;;  %v737_v12 = vadd.f32 %v981_v2, %v736_v10 }
 0x24a   : > { %814 = vst [vmem:[%s1659_s11 + $0x10] sm:$0xff] %v798_v8  ;;  %v799_v42 = vmax.f32 %v745_v9, 0.0 }
 0x24b   : > { %812 = vst [vmem:[%s1659_s11] sm:$0xff] %v796_v11  ;;  %v797_v13 = vmax.f32 %v737_v12, 0.0 }
 0x24c   : > { %815 = vst [vmem:[%s1659_s11 + $0x18] sm:$0xff] %v799_v42 }
 0x24d   : > { %813 = vst [vmem:[%s1659_s11 + $0x8] sm:$0xff] %v797_v13 }
 0x255   : > { %v1100_v14 = vpop.f32.mrb[4].mxu1 }
 0x256   : > { %v758_v15 = vadd.f32 %v1100_v14, %v981_v2  ;;  %v749_v16 = vpop.f32.mrb[5].mxu1 }
 0x257   : > { %v750_v17 = vadd.f32 %v981_v2, %v749_v16  ;;  %v1101_v18 = vpop.f32.mrb[6].mxu1 }
 0x258   : > { %v802_v19 = vmax.f32 %v758_v15, 0.0  ;;  %v761_v20 = vadd.f32 %v1101_v18, %v981_v2  ;;  %v752_v21 = vpop.f32.mrb[7].mxu1 }
 0x259   : > { %v800_v22 = vmax.f32 %v750_v17, 0.0  ;;  %v753_v23 = vadd.f32 %v981_v2, %v752_v21 }
 0x25a   : > { %818 = vst [vmem:[%s1659_s11 + $0x30] sm:$0xff] %v802_v19  ;;  %v803_v24 = vmax.f32 %v761_v20, 0.0 }
 0x25b   : > { %816 = vst [vmem:[%s1659_s11 + $0x20] sm:$0xff] %v800_v22  ;;  %v801_v25 = vmax.f32 %v753_v23, 0.0 }
 0x25c   : > { %819 = vst [vmem:[%s1659_s11 + $0x38] sm:$0xff] %v803_v24 }
 0x25d   : > { %817 = vst [vmem:[%s1659_s11 + $0x28] sm:$0xff] %v801_v25 }
 0x265   : > { %v1104_v26 = vpop.f32.mrb[8].mxu1 }
 0x266   : > { %v774_v27 = vadd.f32 %v1104_v26, %v981_v2  ;;  %v765_v28 = vpop.f32.mrb[9].mxu1 }
 0x267   : > { %v766_v29 = vadd.f32 %v981_v2, %v765_v28  ;;  %v1105_v30 = vpop.f32.mrb[10].mxu1 }
 0x268   : > { %v806_v31 = vmax.f32 %v774_v27, 0.0  ;;  %v777_v32 = vadd.f32 %v1105_v30, %v981_v2  ;;  %v768_v33 = vpop.f32.mrb[11].mxu1 }
 0x269   : > { %v804_v34 = vmax.f32 %v766_v29, 0.0  ;;  %v769_v35 = vadd.f32 %v981_v2, %v768_v33 }
 0x26a   : > { %822 = vst [vmem:[%s1659_s11 + $0x50] sm:$0xff] %v806_v31  ;;  %v807_v36 = vmax.f32 %v777_v32, 0.0 }
 0x26b   : > { %820 = vst [vmem:[%s1659_s11 + $0x40] sm:$0xff] %v804_v34  ;;  %v805_v37 = vmax.f32 %v769_v35, 0.0 }
 0x26c   : > { %823 = vst [vmem:[%s1659_s11 + $0x58] sm:$0xff] %v807_v36 }
 0x26d   : > { %821 = vst [vmem:[%s1659_s11 + $0x48] sm:$0xff] %v805_v37 }
 0x275   : > { %v1108_v38 = vpop.f32.mrb[12].mxu1 }
 0x276   : > { %v790_v39 = vadd.f32 %v1108_v38, %v981_v2  ;;  %v781_v40 = vpop.f32.mrb[13].mxu1 }
 0x277   : > { %v782_v41 = vadd.f32 %v981_v2, %v781_v40  ;;  %v1109_v43 = vpop.f32.mrb[14].mxu1 }
 0x278   : > { %v810_v44 = vmax.f32 %v790_v39, 0.0  ;;  %v793_v45 = vadd.f32 %v1109_v43, %v981_v2  ;;  %v784_v46 = vpop.f32.mrb[15].mxu1 }
 0x279   : > { %v808_v47 = vmax.f32 %v782_v41, 0.0  ;;  %v785_v48 = vadd.f32 %v981_v2, %v784_v46 }
 0x27a   : > { %826 = vst [vmem:[%s1659_s11 + $0x70] sm:$0xff] %v810_v44  ;;  %v811_v49 = vmax.f32 %v793_v45, 0.0 }
 0x27b   : > { %824 = vst [vmem:[%s1659_s11 + $0x60] sm:$0xff] %v808_v47  ;;  %v809_v50 = vmax.f32 %v785_v48, 0.0 }
 0x27c   : > { %827 = vst [vmem:[%s1659_s11 + $0x78] sm:$0xff] %v811_v49 }
 0x27d   : > { %825 = vst [vmem:[%s1659_s11 + $0x68] sm:$0xff] %v809_v50 }
 0x27e   : > { %1330 = shalt.err (!%p1327_p2)
}
 0x27f   : > { %s1331_s6 = scalar_lea.hbm %s1679_s9, 2048  ;;  %s1335_s8 = scalar_lea.hbm %s1733_s5, 4096 }
 0x280   : > { %p1332_p13 = scmp.ne.s32.totalorder %s1679_s9, %s1331_s6  ;;  %p1336_p4 = scmp.lt.u32.totalorder %s1679_s9, %s1733_s5 }
 0x281   : > { %p1337_p5 = scmp.lt.u32.totalorder %s1335_s8, %s1331_s6  ;;  %p1339_p11 = scmp.lt.u32.totalorder %s1331_s6, %s1679_s9 }
 0x282   : > { %p1333_p6 = pnand %p1332_p13, %p1747_p0 }
 0x283   : > { %p1338_p8 = por %p1337_p5, %p1336_p4 }
 0x284   : > { %p1334_p10 = pneg %p1333_p6 }
 0x285   : > { %p1340_p1 = por %p1339_p11, %p1338_p8 }
 0x287   : > { %p1341_p3 = pnand %p1340_p1, %p1334_p10 }
 0x289   : > { %1344 = shalt.err (!%p1341_p3)
}
 0x28a   : > { %s1397_s28 = smov 128   ;;  %s1398_s15 = smov 8  }
 0x28b   : > { %1120 = dma.vmem_to_hbm [thread:$0]  (%p1747_p0), %s1681_s30, 2048, %s1679_s9, %s829_s22, %s1397_s28, %s1397_s28, %s1398_s15  }
 0x28c PF: > { %s857_s16 = sand.u32 1, %s1375_s18   ;;  %p1748_p7 = scmp.ne.s32.totalorder %s1738_s25, 0 }
 0x28d   : > { %p1749_p9 = scmp.ge.s32.totalorder %s1387_s21, 2  ;;  %s858_s12 = scalar_lea.sflag [#allocation4], %s857_s16 }
 0x28f   : > { %p1134_p12 = pnand %p1749_p9, %p1748_p7 }
 0x291   : > { %1370 = dma.done.wait (!%p1134_p12), %s858_s12, 2048  }
 0x292   : > { %1372 = vsyncadd (!%p1134_p12), %s858_s12, 4294965248  ;;  %p19_p2 = scmp.ge.s32.totalorder %s1539_s14, 4   ;;  %s1750_s18 = smov %s1379_s19 }
 0x293   : > { %s1751_s19 = smov %s1383_s20  ;;  %s1752_s20 = smov %s1555_s27 }
 0x294   : > { %s1753_s21 = smov %s1539_s14  ;;  %21 = sbr.rel (!%p19_p2) target bundleno = 6 (0x6), region = 93 }
 0x29b   :  { %863 = vsyncpa [#allocation3], 1 }
 0x29c   :  { %865 = vsyncpa [#allocation3 + $0x1], 1 }
 0x29d   :  { %866 = vsyncpa [#allocation6], 1 }
 0x29e   :  { %867 = vsyncpa [#allocation4], 1 }
 0x29f   :  { %869 = vsyncpa [#allocation4 + $0x1], 1 }

</bundles_post_ra>
